<compile_context>
chip_gen: v7x
topology: tpu7x:2x2x1
jax: 0.10.0
libtpu: 0.0.40
codegen_flags: <defaults>
</compile_context>

<pallas_src>
import functools

import numpy as np
import jax
import jax.numpy as jnp
from jax.experimental import pallas as pl
from jax.experimental.pallas import tpu as pltpu


def _round_up(x, q):
    return ((x + q - 1) // q) * q


def _sublane_quantum(dtype):
    """Minimum sublane tile for a dtype (8 for f32, 16 for bf16, 32 for int8)."""
    return max(8, 32 // np.dtype(dtype).itemsize)


def _pick_tile(dim, pref, quantum):
    """Largest legal tile: full extent if it fits, else `pref` rounded down to
    a multiple of `quantum`."""
    if dim <= pref:
        return dim
    return max(quantum, (pref // quantum) * quantum)


def _num_tensorcores():
    """Best-effort TensorCore-per-device count (2 on v7x / megacore parts)."""
    try:
        kind = jax.devices()[0].device_kind.lower()
    except Exception:
        return 1
    if "v7" in kind or "v4" in kind:
        return 2
    if "v5" in kind and ("lite" not in kind and "5e" not in kind):
        return 2  # v5p megacore
    return 1


def _tiled_pair_reduce(X, Yt, S, mode, *, x2=None, y2=None,
                       tm, tn, tk, vmem_limit_bytes):
    """Tiled reduction over the (mx, my) grid of pairs.

    mode == "recon":   returns sum_ij ((X @ Yt)[i,j] - S[i,j])**2
    mode == "laplace": returns sum_ij  S[i,j] * (x2[i] + y2[j] - 2 (X @ Yt)[i,j])

    X: (mx, d), Yt: (d, my) (already transposed), S: (mx, my).
    x2: (mx, 1), y2: (1, my) precomputed squared row norms (laplace only).
    Result is a scalar f32.
    """
    mx, d = X.shape
    d2, my = Yt.shape
    assert d == d2 and S.shape == (mx, my)
    if mode == "laplace":
        assert x2 is not None and y2 is not None
        assert x2.shape == (mx, 1) and y2.shape == (1, my)

    # --- tile sizing -------------------------------------------------------
    q_row = max(_sublane_quantum(X.dtype), _sublane_quantum(S.dtype))
    # Scale tm with d (bounds the Y^T re-fetch traffic gi * my * d).
    tm_pref = max(tm, min(_round_up(d, q_row), 1024))
    tm_e = _pick_tile(mx, tm_pref, q_row)

    # On 2-TC parts make sure the parallel (row) axis has >= 2 blocks.
    num_tc = _num_tensorcores()
    if num_tc > 1 and mx >= 2 * q_row and pl.cdiv(mx, tm_e) < num_tc:
        tm_e = min(tm_e, max(q_row, _round_up(pl.cdiv(mx, num_tc), q_row)))

    tn_e = _pick_tile(my, tn, 128)   # lane dim of S / columns of Y^T
    tk_e = _pick_tile(d, tk, 128)    # contraction dim (lane dim of X)

    gi = pl.cdiv(mx, tm_e)
    gj = pl.cdiv(my, tn_e)
    gk = pl.cdiv(d, tk_e)

    mask_r = (mx % tm_e) != 0
    mask_c = (my % tn_e) != 0
    use_k = gk > 1
    mask_k = use_k and ((d % tk_e) != 0)

    # Whether the per-tile partial can be kept as an aligned (8,128) vreg.
    vreg_reduce = (tm_e % 8 == 0) and (tn_e % 128 == 0) and tm_e >= 8 and tn_e >= 128

    def _reduce_tile(t):
        """Reduce a (tm_e, tn_e) f32 tile to either an (8,128) vreg partial
        (aligned static slices + VPU adds) or a scalar (fallback)."""
        if not vreg_reduce:
            return jnp.sum(t)
        r = t[0:8, :]
        for a in range(1, tm_e // 8):
            r = r + t[a * 8:(a + 1) * 8, :]
        out = r[:, 0:128]
        for b in range(1, tn_e // 128):
            out = out + r[:, b * 128:(b + 1) * 128]
        return out

    def kernel(*refs):
        if mode == "laplace":
            x_ref, yt_ref, s_ref, x2_ref, y2_ref = refs[:5]
            o_ref = refs[5]
            scr = refs[6:]
        else:
            x_ref, yt_ref, s_ref = refs[:3]
            o_ref = refs[3]
            scr = refs[4:]
        acc_ref = scr[0] if use_k else None

        i = pl.program_id(0)
        j = pl.program_id(1)
        k = pl.program_id(2)

        @pl.when(jnp.logical_and(j == 0, k == 0))
        def _init_out():
            o_ref[...] = jnp.zeros_like(o_ref)

        Xb = x_ref[...]          # (tm_e, tk_e), native dtype
        Ytb = yt_ref[...]        # (tk_e, tn_e), native dtype
        if mask_k:
            # Zero the K tail of BOTH operands so padded garbage (possibly
            # non-finite) cannot leak into valid dot-product entries.
            kpos_r = k * tk_e + jax.lax.broadcasted_iota(jnp.int32, (1, tk_e), 1)
            kpos_c = k * tk_e + jax.lax.broadcasted_iota(jnp.int32, (tk_e, 1), 0)
            Xb = jnp.where(kpos_r < d, Xb, jnp.zeros_like(Xb))
            Ytb = jnp.where(kpos_c < d, Ytb, jnp.zeros_like(Ytb))

        # Single MXU matmul per tile, f32 accumulation, (M,K)x(K,N) layout
        # (no in-kernel RHS transpose).
        Pk = jnp.dot(Xb, Ytb, preferred_element_type=jnp.float32)

        if use_k:
            @pl.when(k == 0)
            def _init_acc():
                acc_ref[...] = jnp.zeros_like(acc_ref)
            acc_ref[...] += Pk

        def accumulate(apply_mask):
            P = acc_ref[...] if use_k else Pk
            Sb = s_ref[...].astype(jnp.float32)
            if mode == "recon":
                term = jnp.square(P - Sb)
            else:
                x2b = x2_ref[...].astype(jnp.float32)   # (tm_e, 1)
                y2b = y2_ref[...].astype(jnp.float32)   # (1, tn_e)
                term = Sb * ((x2b + y2b) - 2.0 * P)
            if apply_mask:
                rmask = (i * tm_e + jax.lax.broadcasted_iota(
                    jnp.int32, (tm_e, 1), 0)) < mx
                cmask = (j * tn_e + jax.lax.broadcasted_iota(
                    jnp.int32, (1, tn_e), 1)) < my
                term = jnp.where(jnp.logical_and(rmask, cmask), term, 0.0)
            o_ref[...] += _reduce_tile(term)

        need_mask = mask_r or mask_c
        if not need_mask:
            if use_k:
                @pl.when(k == gk - 1)
                def _():
                    accumulate(False)
            else:
                accumulate(False)
        else:
            conds = []
            if mask_r:
                conds.append(i == gi - 1)
            if mask_c:
                conds.append(j == gj - 1)
            is_edge = functools.reduce(jnp.logical_or, conds)
            not_edge = jnp.logical_not(is_edge)
            if use_k:
                klast = k == gk - 1
                cond_edge = jnp.logical_and(klast, is_edge)
                cond_int = jnp.logical_and(klast, not_edge)
            else:
                cond_edge, cond_int = is_edge, not_edge

            @pl.when(cond_edge)
            def _():
                accumulate(True)

            @pl.when(cond_int)
            def _():
                accumulate(False)

    in_specs = [
        pl.BlockSpec((tm_e, tk_e), lambda i, j, k: (i, k)),    # X row x K tile
        pl.BlockSpec((tk_e, tn_e), lambda i, j, k: (k, j)),    # Y^T K x col tile
        pl.BlockSpec((tm_e, tn_e), lambda i, j, k: (i, j)),    # S tile
    ]
    operands = [X, Yt, S]
    if mode == "laplace":
        in_specs += [
            pl.BlockSpec((tm_e, 1), lambda i, j, k: (i, 0)),   # |X_i|^2
            pl.BlockSpec((1, tn_e), lambda i, j, k: (0, j)),   # |Y_j|^2
        ]
        operands += [x2, y2]

    scratch_shapes = [pltpu.VMEM((tm_e, tn_e), jnp.float32)] if use_k else []

    flops = int(2 * mx * my * d + 6 * mx * my)
    bytes_accessed = int(4 * (mx * my + gj * mx * d + gi * my * d + mx + my))

    partials = pl.pallas_call(
        kernel,
        out_shape=jax.ShapeDtypeStruct((gi * 8, 128), jnp.float32),
        grid_spec=pltpu.PrefetchScalarGridSpec(
            num_scalar_prefetch=0,
            grid=(gi, gj, gk),
            in_specs=in_specs,
            out_specs=pl.BlockSpec((8, 128), lambda i, j, k: (i, 0)),
            scratch_shapes=scratch_shapes,
        ),
        compiler_params=pltpu.CompilerParams(
            dimension_semantics=("parallel", "arbitrary", "arbitrary"),
            vmem_limit_bytes=vmem_limit_bytes),
        cost_estimate=pl.CostEstimate(flops=flops, transcendentals=0,
                                      bytes_accessed=bytes_accessed),
    )(*operands)

    if vreg_reduce:
        # Every (8,128) block holds genuine elementwise partials.
        return jnp.sum(partials)
    # Scalar fallback: each element of a row-tile block holds the same total.
    return jnp.sum(partials.reshape(gi, 8, 128)[:, 0, 0])


def mean_square_laplacian_loss(U, V, M, A, alpha, *, tm=512, tn=2048, tk=512,
                               vmem_limit_bytes=48 * 1024 * 1024):
    """loss = [ sum((U V^T - M)^2) + alpha * trace(U^T L U) ] / (m*n)
    with L = diag(rowsum((A+A^T)/2)) - (A+A^T)/2.

    tm / tn / tk / vmem_limit_bytes are per-generation tuning knobs.
    Defaults (512, 2048, 512, 48 MiB) fit v7x's 64 MiB per-TC VMEM and are
    safe on v5e/v6e.  Suggested per-generation tweaks:
      v6e: tn up to 4096 and vmem_limit_bytes 64-96 MiB (128 MiB physical);
      v7x: tn 2048-4096 but keep peak VMEM under ~48 MiB; tm is auto-capped
           so the parallel row axis feeds both TensorCores;
      v5e: keep double-buffered S tiles <= ~8-12 MiB (slow HBM hits roofline
           early); sublane quanta are dtype-aware for bf16/int8 inputs.
    """
    m, d = U.shape
    n, d2 = V.shape
    assert d == d2
    assert M.shape == (m, n)
    assert A.shape == (m, m)

    # Reconstruction term: RHS passed pre-transposed (lane-dense (K, N)).
    part1 = _tiled_pair_reduce(U, V.T, M, "recon",
                               tm=tm, tn=tn, tk=tk,
                               vmem_limit_bytes=vmem_limit_bytes)

    # Laplacian term:
    #   trace(U^T L U) = 0.5 * sum_ij A[i,j] * (|U_i|^2 + |U_j|^2 - 2 (U U^T)_ij)
    # Row norms precomputed once here (not per tile in the kernel).
    Uf = U.astype(jnp.float32)
    u2 = jnp.sum(Uf * Uf, axis=1, keepdims=True)            # (m, 1)
    part2 = 0.5 * _tiled_pair_reduce(U, U.T, A, "laplace",
                                     x2=u2, y2=u2.T,
                                     tm=tm, tn=tn, tk=tk,
                                     vmem_limit_bytes=vmem_limit_bytes)

    # alpha and 1/(m*n) folded into the (cheap) JAX wrapper.
    return (part1 + alpha * part2) / float(m * n)


def reference_loss(U, V, M, A, alpha):
    """Pure-JAX mirror of the torch forward pass."""
    part1 = jnp.sum(jnp.square(U @ V.T - M))
    A_sym = 0.5 * (A + A.T)
    L = jnp.diag(jnp.sum(A_sym, axis=1)) - A_sym
    part2 = jnp.trace(U.T @ L @ U)
    return (part1 + alpha * part2) / (M.shape[0] * M.shape[1])


if __name__ == "__main__":
    base_key = jax.random.PRNGKey(0)

    def run_case(case_id, m, n, d, alpha, **kw):
        k1, k2, k3, k4 = jax.random.split(jax.random.fold_in(base_key, case_id), 4)
        U = jax.random.normal(k1, (m, d), dtype=jnp.float32) * 0.1
        V = jax.random.normal(k2, (n, d), dtype=jnp.float32) * 0.1
        M = jax.random.normal(k3, (m, n), dtype=jnp.float32)
        A = jax.random.uniform(k4, (m, m), dtype=jnp.float32)

        out = jax.block_until_ready(
            mean_square_laplacian_loss(U, V, M, A, alpha, **kw))
        ref = jax.block_until_ready(reference_loss(U, V, M, A, alpha))
        np.testing.assert_allclose(np.asarray(out), np.asarray(ref),
                                   rtol=1e-3, atol=1e-5)

    # Case 1: small aligned shapes, default tiles (full-extent, single k step,
    #         vreg-partial path for recon, scalar-partial path for laplace).
    run_case(1, m=64, n=128, d=32, alpha=0.5)
    # Case 2: ragged m / n exercising the 2-D tile grid + boundary-only
    #         tail masking (interior tiles skip the mask passes).
    run_case(2, m=72, n=200, d=48, alpha=0.25, tm=32, tn=128)
    # Case 3: d > tk exercising the K-blocked path (VMEM accumulator scratch,
    #         k-tail masking, consume-at-last-k) for both terms.
    run_case(3, m=96, n=256, d=160, alpha=0.7, tm=48, tn=128, tk=64)

    print("KERNEL_OK")
</pallas_src>

<mosaic_0001>
module attributes {stable_mosaic.version = 11 : i64} {
  func.func @kernel(%arg0: i32, %arg1: i32, %arg2: i32, %arg3: memref<64x32xf32, #tpu.memory_space<vmem>>, %arg4: memref<32x128xf32, #tpu.memory_space<vmem>>, %arg5: memref<64x128xf32, #tpu.memory_space<vmem>>, %arg6: memref<8x128xf32, #tpu.memory_space<vmem>>) attributes {dimension_semantics = [#tpu.dimension_semantics<parallel>, #tpu.dimension_semantics<arbitrary>, #tpu.dimension_semantics<arbitrary>], iteration_bounds = array<i64: 1, 1, 1>, scalar_prefetch = 0 : i64, scratch_operands = 0 : i64, tpu.core_type = #tpu.core_type<tc>, window_params = [{transform_indices = @transform_0, window_bounds = array<i64: 64, 32>}, {transform_indices = @transform_1, window_bounds = array<i64: 32, 128>}, {transform_indices = @transform_2, window_bounds = array<i64: 64, 128>}, {transform_indices = @transform_3, window_bounds = array<i64: 8, 128>}]} {
    %c0_i32 = arith.constant 0 : i32
    %0 = arith.cmpi eq, %arg1, %c0_i32 : i32
    %c0_i32_0 = arith.constant 0 : i32
    %1 = arith.cmpi eq, %arg2, %c0_i32_0 : i32
    %2 = arith.andi %0, %1 : i1
    %3 = arith.extui %2 : i1 to i32
    %c0_i32_1 = arith.constant 0 : i32
    %4 = arith.cmpi ne, %3, %c0_i32_1 : i32
    scf.if %4 {
      %cst_11 = arith.constant 0.000000e+00 : f32
      %29 = vector.broadcast %cst_11 : f32 to vector<8x128xf32>
      %c0_12 = arith.constant 0 : index
      %c0_13 = arith.constant 0 : index
      %30 = vector.load %arg6[%c0_12, %c0_13] : memref<8x128xf32, #tpu.memory_space<vmem>>, vector<8x128xf32>
      tpu.vector_store %arg6[%c0_12, %c0_13], %29 {strides = array<i32>} : memref<8x128xf32, #tpu.memory_space<vmem>>, vector<8x128xf32>,
    } else {
    }
    %c0 = arith.constant 0 : index
    %c0_2 = arith.constant 0 : index
    %5 = vector.load %arg3[%c0, %c0_2] : memref<64x32xf32, #tpu.memory_space<vmem>>, vector<64x32xf32>
    %c0_3 = arith.constant 0 : index
    %c0_4 = arith.constant 0 : index
    %6 = vector.load %arg4[%c0_3, %c0_4] : memref<32x128xf32, #tpu.memory_space<vmem>>, vector<32x128xf32>
    %cst = arith.constant dense<0.000000e+00> : vector<64x128xf32>
    %7 = tpu.matmul %5, %6, %cst {dimension_numbers = #tpu.dot_dimension_numbers<[1], [0], [0], [1], [0, 0, 1, 1], [], []>} : vector<64x32xf32>, vector<32x128xf32>, vector<64x128xf32> -> vector<64x128xf32>
    %c0_5 = arith.constant 0 : index
    %c0_6 = arith.constant 0 : index
    %8 = vector.load %arg5[%c0_5, %c0_6] : memref<64x128xf32, #tpu.memory_space<vmem>>, vector<64x128xf32>
    %9 = arith.subf %7, %8 : vector<64x128xf32>
    %10 = arith.mulf %9, %9 : vector<64x128xf32>
    %c0_7 = arith.constant 0 : index
    %c0_8 = arith.constant 0 : index
    %11 = vector.load %arg6[%c0_7, %c0_8] : memref<8x128xf32, #tpu.memory_space<vmem>>, vector<8x128xf32>
    %12 = vector.extract_strided_slice %10 {offsets = [0, 0], sizes = [8, 128], strides = [1, 1]} : vector<64x128xf32> to vector<8x128xf32>
    %13 = vector.extract_strided_slice %10 {offsets = [8, 0], sizes = [8, 128], strides = [1, 1]} : vector<64x128xf32> to vector<8x128xf32>
    %14 = arith.addf %12, %13 : vector<8x128xf32>
    %15 = vector.extract_strided_slice %10 {offsets = [16, 0], sizes = [8, 128], strides = [1, 1]} : vector<64x128xf32> to vector<8x128xf32>
    %16 = arith.addf %14, %15 : vector<8x128xf32>
    %17 = vector.extract_strided_slice %10 {offsets = [24, 0], sizes = [8, 128], strides = [1, 1]} : vector<64x128xf32> to vector<8x128xf32>
    %18 = arith.addf %16, %17 : vector<8x128xf32>
    %19 = vector.extract_strided_slice %10 {offsets = [32, 0], sizes = [8, 128], strides = [1, 1]} : vector<64x128xf32> to vector<8x128xf32>
    %20 = arith.addf %18, %19 : vector<8x128xf32>
    %21 = vector.extract_strided_slice %10 {offsets = [40, 0], sizes = [8, 128], strides = [1, 1]} : vector<64x128xf32> to vector<8x128xf32>
    %22 = arith.addf %20, %21 : vector<8x128xf32>
    %23 = vector.extract_strided_slice %10 {offsets = [48, 0], sizes = [8, 128], strides = [1, 1]} : vector<64x128xf32> to vector<8x128xf32>
    %24 = arith.addf %22, %23 : vector<8x128xf32>
    %25 = vector.extract_strided_slice %10 {offsets = [56, 0], sizes = [8, 128], strides = [1, 1]} : vector<64x128xf32> to vector<8x128xf32>
    %26 = arith.addf %24, %25 : vector<8x128xf32>
    %27 = arith.addf %11, %26 : vector<8x128xf32>
    %c0_9 = arith.constant 0 : index
    %c0_10 = arith.constant 0 : index
    %28 = vector.load %arg6[%c0_9, %c0_10] : memref<8x128xf32, #tpu.memory_space<vmem>>, vector<8x128xf32>
    tpu.vector_store %arg6[%c0_9, %c0_10], %27 {strides = array<i32>} : memref<8x128xf32, #tpu.memory_space<vmem>>, vector<8x128xf32>,
    return
  }
  func.func @transform_0(%arg0: i32, %arg1: i32, %arg2: i32) -> (i32, i32) {
    %c0_i32 = arith.constant 0 : i32
    return %arg0, %arg2 : i32, i32
  }
  func.func @transform_1(%arg0: i32, %arg1: i32, %arg2: i32) -> (i32, i32) {
    %c0_i32 = arith.constant 0 : i32
    return %arg2, %arg1 : i32, i32
  }
  func.func @transform_2(%arg0: i32, %arg1: i32, %arg2: i32) -> (i32, i32) {
    %c0_i32 = arith.constant 0 : i32
    return %arg0, %arg1 : i32, i32
  }
  func.func @transform_3(%arg0: i32, %arg1: i32, %arg2: i32) -> (i32, i32) {
    %c0_i32 = arith.constant 0 : i32
    %c0_i32_0 = arith.constant 0 : i32
    return %arg0, %c0_i32 : i32, i32
  }
}

</mosaic_0001>

<bundles_post_ra>
// kernel: tpu_custom_call.1
= control target key start
LH: loop header
LB: loop body
LE: loop exit
PB: predicated region body
PF: predicated region fallthrough
CT: control target
= control target key end

     0   :  { %vm34_vm0 = vcmask 261120   ;;  %s391_s0 = inlined_call_operand.vmem [shape: f32[64,32], index: 0, kind: input, shape index: {}]   ;;  %s392_s1 = inlined_call_operand.vmem [shape: f32[32,128], index: 1, kind: input, shape index: {}]   ;;  %s393_s2 = inlined_call_operand.vmem [shape: f32[64,128], index: 2, kind: input, shape index: {}]   ;;  %s394_s3 = inlined_call_operand.hbm [shape: f32[8,128], index: 3, kind: output, shape index: {}]  }
   0x1   :  { %v30_v0 = vld [vmem:[%s392_s1] sm:$0xff]  ;;  %v31_v1 = vld [vmem:[%s392_s1 + $0x8] sm:$0xff]  ;;  %v32_v2 = vld [vmem:[%s392_s1 + $0x10] sm:$0xff] }
   0x2   :  { %v252_v3 = vpack.c.bf16 %v31_v1, %v30_v0  ;;  %v33_v4 = vld [vmem:[%s392_s1 + $0x18] sm:$0xff]  ;;  %v22_v5 = vld [vmem:[%s391_s0] sm:$0xff] }
   0x3   :  { %v256_v6 = vpack.c.bf16 %v33_v4, %v32_v2  ;;  %240 = vmatprep.mubr.msk.f32.mxu0 %vm34_vm0, %v22_v5  ;;  %v26_v7 = vld [vmem:[%s391_s0 + $0x20] sm:$0xff] }
   0x4   :  { %253 = vmatprep.subr.bf16.mxu0 %v252_v3  ;;  %260 = vmatprep.subr.bf16.mxu1 %v252_v3 }
   0x5   :  { %255 = vmatpush3.bf16.msra.mxu0 %v252_v3  ;;  %262 = vmatpush3.bf16.msra.mxu1 %v252_v3 }
   0x6   :  { %8 = vsyncpa [#allocation3], 0  ;;  %257 = vmatprep.subr.bf16.mxu0 %v256_v6  ;;  %261 = vmatprep.subr.bf16.mxu1 %v256_v6  ;;  %v23_v8 = vld [vmem:[%s391_s0 + $0x8] sm:$0xff]  ;;  %v24_v10 = vld [vmem:[%s391_s0 + $0x10] sm:$0xff]  ;;  %s290_s23 = smov [#allocation2]  }
   0x7   :  { %246 = vmatprep.mubr.msk.f32.mxu1 %vm34_vm0, %v26_v7  ;;  %v27_v9 = vld [vmem:[%s391_s0 + $0x28] sm:$0xff]  ;;  %v28_v11 = vld [vmem:[%s391_s0 + $0x30] sm:$0xff]  ;;  %v25_v12 = vld [vmem:[%s391_s0 + $0x18] sm:$0xff]  ;;  %s204_s1 = sshll.u32 %s290_s23, 4  ;;  %s205_s1 = int_to_ptr.vmem [resolvable:$true] %s204_s1 }
   0x8   :  { %v29_v13 = vld [vmem:[%s391_s0 + $0x38] sm:$0xff]  ;;  %v165_v14 = vld [vmem:[%s393_s2 + $0x8] sm:$0xff]  ;;  %v164_v15 = vld [vmem:[%s393_s2] sm:$0xff]  ;;  %s266_s24 = scalar_lea.vmem %s205_s1, 128  ;;  %p271_p1 = scmp.lt.s32.totalorder %s205_s1, %s205_s1 }
   0x9   :  { %259 = vmatpush3.bf16.msra.mxu0 %v256_v6  ;;  %263 = vmatpush3.bf16.msra.mxu1 %v256_v6  ;;  %v167_v23 = vld [vmem:[%s393_s2 + $0x18] sm:$0xff]  ;;  %v166_v24 = vld [vmem:[%s393_s2 + $0x10] sm:$0xff]  ;;  %v168_v25 = vld [vmem:[%s393_s2 + $0x20] sm:$0xff]  ;;  %p267_p0 = scmp.ne.s32.totalorder %s205_s1, %s266_s24  ;;  %p272_p2 = scmp.lt.s32.totalorder %s266_s24, %s266_s24 }
   0xa   :  { %v169_v34 = vld [vmem:[%s393_s2 + $0x28] sm:$0xff]  ;;  %v170_v36 = vld [vmem:[%s393_s2 + $0x30] sm:$0xff]  ;;  %v171_v43 = vld [vmem:[%s393_s2 + $0x38] sm:$0xff] }
   0xb   :  { %p273_p3 = por %p272_p2, %p271_p1 }
   0xc   :  { %241 = vmatmul.mubr.msk.f32.vlgmr.msra.gmra.mrb[0].mxu0 %vm34_vm0, %v23_v8  ;;  %247 = vmatmul.mubr.msk.f32.vlgmr.msra.gmra.mrb[0].mxu1 %vm34_vm0, %v27_v9 }
   0xd   :  { %243 = vmatprep.mubr.msk.f32.mxu0 %vm34_vm0, %v24_v10  ;;  %249 = vmatprep.mubr.msk.f32.mxu1 %vm34_vm0, %v28_v11  ;;  %p274_p4 = pnand %p273_p3, %p267_p0 }
  0x10   :  { %244 = vmatmul.mubr.msk.f32.gmra.mrb[2].mxu0 %vm34_vm0, %v25_v12  ;;  %250 = vmatmul.mubr.msk.f32.gmra.mrb[2].mxu1 %vm34_vm0, %v29_v13 }
  0xdf   :  { %v242_v16 = vpop.f32.mrb[0].mxu0  ;;  %v248_v17 = vpop.f32.mrb[0].mxu1 }
  0xe0   :  { %v173_v18 = vsub.f32 %v242_v16, %v165_v14  ;;  %v125_v19 = vpop.f32.mrb[1].mxu0  ;;  %v145_v20 = vpop.f32.mrb[1].mxu1  ;;  %v177_v38 = vsub.f32 %v248_v17, %v169_v34 }
  0xe1   :  { %v172_v21 = vsub.f32 %v125_v19, %v164_v15  ;;  %v176_v35 = vsub.f32 %v145_v20, %v168_v25 }
  0xe2   :  { %v181_v22 = vmul.f32 %v173_v18, %v173_v18  ;;  %v185_v45 = vmul.f32 %v177_v38, %v177_v38 }
  0xe3   :  { %v180_v26 = vmul.f32 %v172_v21, %v172_v21  ;;  %v245_v27 = vpop.f32.mrb[2].mxu0  ;;  %v251_v28 = vpop.f32.mrb[2].mxu1  ;;  %v184_v41 = vmul.f32 %v176_v35, %v176_v35 }
  0xe4   :  { %v135_v29 = vpop.f32.mrb[3].mxu0  ;;  %v155_v30 = vpop.f32.mrb[3].mxu1  ;;  %v175_v32 = vsub.f32 %v245_v27, %v167_v23  ;;  %v179_v47 = vsub.f32 %v251_v28, %v171_v43 }
  0xe5   :  { %v189_v31 = vadd.f32 %v181_v22, %v180_v26  ;;  %v174_v33 = vsub.f32 %v135_v29, %v166_v24  ;;  %v178_v42 = vsub.f32 %v155_v30, %v170_v36 }
  0xe6   :  { %v183_v39 = vmul.f32 %v175_v32, %v175_v32  ;;  %v187_v50 = vmul.f32 %v179_v47, %v179_v47 }
  0xe7   :  { %v182_v37 = vmul.f32 %v174_v33, %v174_v33  ;;  %v186_v48 = vmul.f32 %v178_v42, %v178_v42 }
  0xe9   :  { %v190_v40 = vadd.f32 %v189_v31, %v182_v37 }
  0xeb   :  { %v191_v44 = vadd.f32 %v190_v40, %v183_v39 }
  0xed   :  { %v192_v46 = vadd.f32 %v191_v44, %v184_v41 }
  0xef   :  { %v193_v49 = vadd.f32 %v192_v46, %v185_v45 }
  0xf1   :  { %v194_v51 = vadd.f32 %v193_v49, %v186_v48 }
  0xf3   :  { %v195_v52 = vadd.f32 %v194_v51, %v187_v50 }
  0xf5   :  { %197 = vst [vmem:[#allocation2] sm:$0xff] %v195_v52 }
  0xf6   :  { %277 = shalt.err (!%p274_p4)
}
  0xf7   :  { %s278_s26 = scalar_lea.hbm %s394_s3, 128 }
  0xf8   :  { %p279_p5 = scmp.ne.s32.totalorder %s394_s3, %s278_s26  ;;  %p282_p6 = scmp.lt.u32.totalorder %s278_s26, %s394_s3 }
  0xfa   :  { %p284_p7 = pnand %p282_p6, %p279_p5 }
  0xfc   :  { %287 = shalt.err (!%p284_p7)
}
  0xfd   :  { %207 = dma.vmem_to_hbm [thread:$0]  %s205_s1, 128, %s394_s3, [#allocation3]  }
  0xfe   :  { %288 = dma.done.wait [#allocation3], 128  }
  0xff   :  { %289 = vsyncadd [#allocation3], 4294967168 }
 0x100   :  { %211 = vsyncpa [#allocation3], 1 }

</bundles_post_ra>
